<compile_context>
chip_gen: v7x
topology: tpu7x:2x2x1
jax: 0.10.0
libtpu: 0.0.40
codegen_flags: <defaults>
</compile_context>

<pallas_src>
import functools

import jax
import jax.numpy as jnp
from jax import lax
from jax.experimental import pallas as pl
from jax.experimental.pallas import tpu as pltpu


# --------------------------------------------------------------------------- #
# helpers
# --------------------------------------------------------------------------- #
def _round_up(n, m):
    return ((n + m - 1) // m) * m


def _vmem_capacity_bytes():
    try:
        return int(pltpu.get_tpu_info().vmem_capacity_bytes)
    except Exception:
        return 64 << 20  # v7x floor (64 MiB per TensorCore); conservative default


# --------------------------------------------------------------------------- #
# kernels
# --------------------------------------------------------------------------- #
def _se_fused_kernel(x_ref, w_ref, b_ref, o_ref, *, inv_hw):
    """Single-pass SE for a pack of Bt batch elements.

    x_ref : (Bt, C, HW)  I/O dtype (full C / HW dims, no padding)
    w_ref : (C, C)       fp32 1x1-conv weight, pre-transposed to (in_ch, out_ch)
    b_ref : (1, C)       fp32 bias
    o_ref : (Bt, C, HW)
    """
    x = x_ref[...]                                                # (Bt, C, HW)
    # Global average pool with fp32 accumulation (exact H*W divisor).
    pooled = jnp.sum(x.astype(jnp.float32), axis=-1) * inv_hw     # (Bt, C) fp32
    # Batched 1x1 conv (GEMV widened over Bt) + bias + sigmoid, all fp32.
    s = jnp.dot(pooled, w_ref[...], preferred_element_type=jnp.float32)
    s = s + b_ref[...]
    scale = jax.nn.sigmoid(s)                                     # (Bt, C) fp32
    # Elementwise scale in the I/O dtype: no full-slab fp32 temporary.
    o_ref[...] = x * scale.astype(x.dtype)[:, :, None]


def _scale_rows_kernel(x_ref, s_ref, o_ref):
    """Two-pass fallback, pass 2: pure elementwise row scaling.

    x_ref : (rt, ht)   folded (B*C, HW) tile, I/O dtype
    s_ref : (rt, 1)    per-row precomputed sigmoid scale (fp32)
    o_ref : (rt, ht)
    """
    x = x_ref[...]
    o_ref[...] = x * s_ref[...].astype(x.dtype)


# --------------------------------------------------------------------------- #
# SE block paths
# --------------------------------------------------------------------------- #
def _se_single_pass(x, w, b, *, B, C, H, W, Bt, resident, vmem_cap):
    HW = H * W
    x3 = x.reshape(B, C, HW)                         # contiguous reshape: free
    w_t = jnp.asarray(w, jnp.float32).T              # (in_ch, out_ch); tiny
    b2 = jnp.asarray(b, jnp.float32).reshape(1, C)   # tiny

    kernel = functools.partial(_se_fused_kernel, inv_hw=1.0 / HW)
    # VMEM limit from the actual footprint; 0.8*cap ceiling leaves headroom for
    # Mosaic internal scratch (important on v7x's 64 MiB).
    vmem_limit = int(min(max(resident + (4 << 20), 32 << 20), int(0.8 * vmem_cap)))

    out = pl.pallas_call(
        kernel,
        out_shape=jax.ShapeDtypeStruct((B, C, HW), x.dtype),
        grid_spec=pltpu.PrefetchScalarGridSpec(
            num_scalar_prefetch=0,
            grid=(B // Bt,),
            in_specs=[
                # Full C / HW dims: exempt from the (8,128) rule -> no pads.
                pl.BlockSpec((Bt, C, HW), lambda i: (i, 0, 0)),
                pl.BlockSpec((C, C), lambda i: (0, 0)),   # loop-invariant, tiny
                pl.BlockSpec((1, C), lambda i: (0, 0)),   # loop-invariant, tiny
            ],
            out_specs=pl.BlockSpec((Bt, C, HW), lambda i: (i, 0, 0)),
        ),
        compiler_params=pltpu.CompilerParams(
            dimension_semantics=("parallel",),
            vmem_limit_bytes=vmem_limit),
    )(x3, w_t, b2)
    return out.reshape(B, C, H, W)


def _se_two_pass(x, w, b, *, B, C, H, W, vmem_cap, vmem_budget):
    HW = H * W
    itemsize = jnp.dtype(x.dtype).itemsize
    R = B * C

    # ---- pass 1: global avg pool + 1x1 conv + sigmoid (tiny; left to XLA) ---
    pooled = jnp.mean(x.astype(jnp.float32), axis=(2, 3))                    # (B, C)
    s = pooled @ jnp.asarray(w, jnp.float32).T + jnp.asarray(b, jnp.float32)[None, :]
    scale = jax.nn.sigmoid(s).reshape(R, 1)                                  # (R, 1)

    # ---- pass 2: fold to (B*C, HW) rows; NO channel padding, NO pad copies --
    x_rows = x.reshape(R, HW)                        # contiguous reshape: free

    # Per-block byte budget (2x in + 2x out double buffers must fit comfortably).
    blk_budget = max(1 << 20, min(16 << 20, vmem_budget // 6))

    row_bytes = HW * itemsize
    if 8 * row_bytes <= blk_budget:
        ht = HW                                       # full dim: exempt from 128 rule
    else:
        max_lanes = max(128, (blk_budget // (8 * itemsize)) // 128 * 128)
        n_l = pl.cdiv(HW, max_lanes)                  # balanced chunks -> tiny tail waste
        ht = _round_up(pl.cdiv(HW, n_l), 128)
    grid_l = pl.cdiv(HW, ht)

    max_rows = max(8, (blk_budget // (ht * itemsize)) // 8 * 8)
    if R <= max_rows:
        rt = R                                        # full dim: exempt from 8 rule
    else:
        n_r = pl.cdiv(R, max_rows)
        rt = _round_up(pl.cdiv(R, n_r), 8)
    grid_r = pl.cdiv(R, rt)

    blk_bytes = rt * ht * itemsize
    vmem_limit = int(min(max(4 * blk_bytes + (8 << 20), 32 << 20), int(0.8 * vmem_cap)))

    out = pl.pallas_call(
        _scale_rows_kernel,
        out_shape=jax.ShapeDtypeStruct((R, HW), x.dtype),
        grid_spec=pltpu.PrefetchScalarGridSpec(
            num_scalar_prefetch=0,
            grid=(grid_r, grid_l),
            in_specs=[
                pl.BlockSpec((rt, ht), lambda i, j: (i, j)),
                pl.BlockSpec((rt, 1), lambda i, j: (i, 0)),
            ],
            out_specs=pl.BlockSpec((rt, ht), lambda i, j: (i, j)),
        ),
        compiler_params=pltpu.CompilerParams(
            dimension_semantics=("parallel", "parallel"),
            vmem_limit_bytes=vmem_limit),
    )(x_rows, scale)
    return out.reshape(B, C, H, W)


def se_block(x, w, b, *, force_two_pass=False, vmem_budget_bytes=None):
    """SE block: x * sigmoid(Conv1x1(GlobalAvgPool(x))).

    x: (B, C, H, W) fp32 or bf16; w: (C, C) 1x1-conv weight (out_ch, in_ch);
    b: (C,) bias.  Returns same shape/dtype as x.
    """
    B, C, H, W = x.shape
    HW = H * W
    itemsize = jnp.dtype(x.dtype).itemsize
    vmem_cap = _vmem_capacity_bytes()
    if vmem_budget_bytes is None:
        vmem_budget_bytes = int(0.65 * vmem_cap)

    # Per-batch-element VMEM footprint of the single-pass path:
    #   double-buffered input + output blocks (4x) in the I/O dtype, plus the
    #   fp32 upcast temp for the pooled sum when the I/O dtype is not fp32.
    slab_io = C * HW * itemsize
    slab_f32 = C * HW * 4 if x.dtype != jnp.float32 else 0
    per_batch = 4 * slab_io + slab_f32
    small = 2 * (C * C + C) * 4 + (1 << 20)           # w, b, misc scratch margin

    if force_two_pass or per_batch + small > vmem_budget_bytes:
        return _se_two_pass(x, w, b, B=B, C=C, H=H, W=W,
                            vmem_cap=vmem_cap, vmem_budget=vmem_budget_bytes)

    # Pack Bt batch elements per grid step so each block moves ~MiBs (amortizes
    # per-step overhead for tiny feature maps) while staying in budget.
    target_block = 4 << 20
    max_bt = max(1, min(B,
                        (vmem_budget_bytes - small) // per_batch,
                        max(1, target_block // max(slab_io, 1))))
    Bt = 1
    for d in range(1, B + 1):
        if B % d == 0 and d <= max_bt:
            Bt = d
    resident = Bt * per_batch + small

    return _se_single_pass(x, w, b, B=B, C=C, H=H, W=W, Bt=Bt,
                           resident=resident, vmem_cap=vmem_cap)


# --------------------------------------------------------------------------- #
# DynamicFuser forward (conv/BN/ReLU in XLA, SE in Pallas) + references
# --------------------------------------------------------------------------- #
def channel_concate(inputs, conv_w, bn_gamma, bn_beta, bn_mean, bn_var, eps=1e-5):
    x = jnp.concatenate(inputs, axis=1)
    y = lax.conv_general_dilated(
        x, conv_w, window_strides=(1, 1), padding=((1, 1), (1, 1)),
        dimension_numbers=("NCHW", "OIHW", "NCHW"))
    inv = bn_gamma / jnp.sqrt(bn_var + eps)
    y = y * inv[None, :, None, None] + (bn_beta - bn_mean * inv)[None, :, None, None]
    return jnp.maximum(y, 0.0)


def dynamic_fuser(inputs, conv_w, bn_params, se_w, se_b, **se_kwargs):
    ct = channel_concate(inputs, conv_w, *bn_params)
    return se_block(ct, se_w, se_b, **se_kwargs)


def se_block_ref(x, w, b):
    xf = x.astype(jnp.float32)
    pooled = jnp.mean(xf, axis=(2, 3), keepdims=True)
    s = jnp.einsum("oc,bcij->boij", w.astype(jnp.float32), pooled)
    s = s + b.astype(jnp.float32)[None, :, None, None]
    return (xf * jax.nn.sigmoid(s)).astype(x.dtype)


# --------------------------------------------------------------------------- #
if __name__ == "__main__":
    key = jax.random.PRNGKey(0)
    keys = jax.random.split(key, 12)

    # DynamicFuser config: in_channels=[2, 2], out_channels=4, 16x16 features.
    B, H, W = 2, 16, 16
    in_channels = (2, 2)
    C = 4

    inputs = [jax.random.normal(keys[i], (B, ci, H, W), jnp.float32)
              for i, ci in enumerate(in_channels)]
    conv_w = jax.random.normal(keys[2], (C, sum(in_channels), 3, 3), jnp.float32) * 0.1
    bn_gamma = 1.0 + 0.1 * jax.random.normal(keys[3], (C,), jnp.float32)
    bn_beta = 0.1 * jax.random.normal(keys[4], (C,), jnp.float32)
    bn_mean = 0.1 * jax.random.normal(keys[5], (C,), jnp.float32)
    bn_var = jnp.abs(jax.random.normal(keys[6], (C,), jnp.float32)) + 0.5
    bn_params = (bn_gamma, bn_beta, bn_mean, bn_var)
    se_w = jax.random.normal(keys[7], (C, C), jnp.float32) * 0.1
    se_b = jax.random.normal(keys[8], (C,), jnp.float32) * 0.1

    # --- SE block alone: single-pass Pallas path (unaligned C=4, HW=256) -----
    x = jax.random.normal(keys[9], (B, C, H, W), jnp.float32)
    out1 = jax.block_until_ready(se_block(x, se_w, se_b))
    ref1 = se_block_ref(x, se_w, se_b)
    assert out1.shape == (B, C, H, W)
    assert jnp.allclose(out1, ref1, atol=1e-5, rtol=1e-5)

    # --- SE block: two-pass (VMEM-constrained) fallback path -----------------
    out2 = jax.block_until_ready(se_block(x, se_w, se_b, force_two_pass=True))
    assert jnp.allclose(out2, ref1, atol=1e-5, rtol=1e-5)

    # --- SE block: bf16 I/O (pooled/1x1/sigmoid math stays fp32 inside) ------
    xb = x.astype(jnp.bfloat16)
    out3 = jax.block_until_ready(se_block(xb, se_w, se_b))
    ref3 = se_block_ref(xb, se_w, se_b)
    assert jnp.allclose(out3.astype(jnp.float32), ref3.astype(jnp.float32),
                        atol=5e-2, rtol=5e-2)

    # --- SE block: odd unaligned shapes (B=3, C=12, HW=1600), both paths -----
    x_odd = jax.random.normal(keys[10], (3, 12, 40, 40), jnp.float32)
    w_odd = jax.random.normal(keys[11], (12, 12), jnp.float32) * 0.1
    b_odd = jnp.linspace(-0.2, 0.2, 12, dtype=jnp.float32)
    ref_odd = se_block_ref(x_odd, w_odd, b_odd)
    out_odd1 = jax.block_until_ready(se_block(x_odd, w_odd, b_odd))
    out_odd2 = jax.block_until_ready(
        se_block(x_odd, w_odd, b_odd, force_two_pass=True))
    assert jnp.allclose(out_odd1, ref_odd, atol=1e-5, rtol=1e-5)
    assert jnp.allclose(out_odd2, ref_odd, atol=1e-5, rtol=1e-5)

    # --- Full DynamicFuser forward --------------------------------------------
    fused = jax.block_until_ready(
        dynamic_fuser(inputs, conv_w, bn_params, se_w, se_b))
    ct = channel_concate(inputs, conv_w, *bn_params)
    fref = se_block_ref(ct, se_w, se_b)
    assert fused.shape == (B, C, H, W)
    assert jnp.allclose(fused, fref, atol=1e-5, rtol=1e-5)

    print("KERNEL_OK")
</pallas_src>

<mosaic_0001>
module attributes {stable_mosaic.version = 11 : i64} {
  func.func @_se_fused_kernel(%arg0: i32, %arg1: memref<2x4x256xf32, #tpu.memory_space<vmem>>, %arg2: memref<4x4xf32, #tpu.memory_space<vmem>>, %arg3: memref<1x4xf32, #tpu.memory_space<vmem>>, %arg4: memref<2x4x256xf32, #tpu.memory_space<vmem>>) attributes {dimension_semantics = [#tpu.dimension_semantics<parallel>], iteration_bounds = array<i64: 1>, scalar_prefetch = 0 : i64, scratch_operands = 0 : i64, tpu.core_type = #tpu.core_type<tc>, window_params = [{transform_indices = @transform_0, window_bounds = array<i64: 2, 4, 256>}, {pipeline_mode = #tpu.pipeline_mode<synchronous>, transform_indices = @transform_1, window_bounds = array<i64: 4, 4>}, {pipeline_mode = #tpu.pipeline_mode<synchronous>, transform_indices = @transform_2, window_bounds = array<i64: 1, 4>}, {transform_indices = @transform_3, window_bounds = array<i64: 2, 4, 256>}]} {
    %c0 = arith.constant 0 : index
    %c0_0 = arith.constant 0 : index
    %c0_1 = arith.constant 0 : index
    %0 = vector.load %arg1[%c0, %c0_0, %c0_1] : memref<2x4x256xf32, #tpu.memory_space<vmem>>, vector<2x4x256xf32>
    %cst = arith.constant dense<0.000000e+00> : vector<2x4xf32>
    %1 = vector.multi_reduction <add>, %0, %cst [2] : vector<2x4x256xf32> to vector<2x4xf32>
    %cst_2 = arith.constant 3.906250e-03 : f32
    %2 = vector.broadcast %cst_2 : f32 to vector<2x4xf32>
    %3 = arith.mulf %1, %2 : vector<2x4xf32>
    %c0_3 = arith.constant 0 : index
    %c0_4 = arith.constant 0 : index
    %4 = vector.load %arg2[%c0_3, %c0_4] : memref<4x4xf32, #tpu.memory_space<vmem>>, vector<4x4xf32>
    %cst_5 = arith.constant dense<0.000000e+00> : vector<2x4xf32>
    %5 = tpu.matmul %3, %4, %cst_5 {dimension_numbers = #tpu.dot_dimension_numbers<[1], [0], [0], [1], [0, 0, 1, 1], [], []>} : vector<2x4xf32>, vector<4x4xf32>, vector<2x4xf32> -> vector<2x4xf32>
    %c0_6 = arith.constant 0 : index
    %c0_7 = arith.constant 0 : index
    %6 = vector.load %arg3[%c0_6, %c0_7] : memref<1x4xf32, #tpu.memory_space<vmem>>, vector<1x4xf32>
    %7 = vector.broadcast %6 : vector<1x4xf32> to vector<2x4xf32>
    %8 = arith.addf %5, %7 : vector<2x4xf32>
    %9 = arith.negf %8 : vector<2x4xf32>
    %10 = math.exp %9 : vector<2x4xf32>
    %cst_8 = arith.constant 1.000000e+00 : f32
    %11 = vector.broadcast %cst_8 : f32 to vector<2x4xf32>
    %12 = arith.addf %11, %10 : vector<2x4xf32>
    %13 = arith.divf %11, %12 : vector<2x4xf32>
    %14 = vector.shape_cast %13 : vector<2x4xf32> to vector<2x4x1xf32>
    %15 = vector.broadcast %14 : vector<2x4x1xf32> to vector<2x4x256xf32>
    %16 = arith.mulf %0, %15 : vector<2x4x256xf32>
    %c0_9 = arith.constant 0 : index
    %c0_10 = arith.constant 0 : index
    %c0_11 = arith.constant 0 : index
    %17 = vector.load %arg4[%c0_9, %c0_10, %c0_11] : memref<2x4x256xf32, #tpu.memory_space<vmem>>, vector<2x4x256xf32>
    tpu.vector_store %arg4[%c0_9, %c0_10, %c0_11], %16 {strides = array<i32>} : memref<2x4x256xf32, #tpu.memory_space<vmem>>, vector<2x4x256xf32>,
    return
  }
  func.func @transform_0(%arg0: i32) -> (i32, i32, i32) {
    %c0_i32 = arith.constant 0 : i32
    %c0_i32_0 = arith.constant 0 : i32
    %c0_i32_1 = arith.constant 0 : i32
    return %arg0, %c0_i32, %c0_i32_0 : i32, i32, i32
  }
  func.func @transform_1(%arg0: i32) -> (i32, i32) {
    %c0_i32 = arith.constant 0 : i32
    %c0_i32_0 = arith.constant 0 : i32
    %c0_i32_1 = arith.constant 0 : i32
    return %c0_i32, %c0_i32_0 : i32, i32
  }
  func.func @transform_2(%arg0: i32) -> (i32, i32) {
    %c0_i32 = arith.constant 0 : i32
    %c0_i32_0 = arith.constant 0 : i32
    %c0_i32_1 = arith.constant 0 : i32
    return %c0_i32, %c0_i32_0 : i32, i32
  }
  func.func @transform_3(%arg0: i32) -> (i32, i32, i32) {
    %c0_i32 = arith.constant 0 : i32
    %c0_i32_0 = arith.constant 0 : i32
    %c0_i32_1 = arith.constant 0 : i32
    return %arg0, %c0_i32, %c0_i32_0 : i32, i32, i32
  }
}

</mosaic_0001>

<bundles_post_ra>
// kernel: tpu_custom_call.1
= control target key start
LH: loop header
LB: loop body
LE: loop exit
PB: predicated region body
PF: predicated region fallthrough
CT: control target
= control target key end

     0   :  { %8 = vsyncpa [#allocation3], 0  ;;  %s395_s0 = inlined_call_operand.hbm [shape: f32[2,4,256], index: 0, kind: input, shape index: {}]   ;;  %s396_s1 = inlined_call_operand.hbm [shape: f32[4,4], index: 1, kind: input, shape index: {}]   ;;  %s397_s2 = inlined_call_operand.vmem [shape: f32[1,4], index: 2, kind: input, shape index: {}]   ;;  %s398_s3 = inlined_call_operand.hbm [shape: f32[2,4,256], index: 3, kind: output, shape index: {}]  }
   0x1   :  { %9 = vsyncpa [#allocation6], 0 }
   0x2   :  { %10 = vsyncpa [#allocation4], 0  ;;  %s317_s12 = smov [#allocation2]   ;;  %s245_s16 = scalar_lea.hbm %s395_s0, 256 }
   0x3   :  { %s16_s13 = sshll.u32 %s317_s12, 4  ;;  %p246_p0 = scmp.ne.s32.totalorder %s395_s0, %s245_s16  ;;  %s17_s13 = int_to_ptr.vmem [resolvable:$true] %s16_s13 }
   0x4   :  { %p249_p1 = scmp.lt.u32.totalorder %s245_s16, %s395_s0 }
   0x6   :  { %p251_p2 = pnand %p249_p1, %p246_p0 }
   0x8   :  { %254 = shalt.err (!%p251_p2)
}
   0x9   :  { %s255_s21 = scalar_lea.vmem %s17_s13, 256  ;;  %p260_p4 = scmp.lt.s32.totalorder %s17_s13, %s17_s13 }
   0xa   :  { %p256_p3 = scmp.ne.s32.totalorder %s17_s13, %s255_s21  ;;  %p261_p5 = scmp.lt.s32.totalorder %s255_s21, %s255_s21 }
   0xc   :  { %p262_p6 = por %p261_p5, %p260_p4 }
   0xe   :  { %p263_p7 = pnand %p262_p6, %p256_p3 }
  0x10   :  { %266 = shalt.err (!%p263_p7)
}
  0x11   :  { %s318_s22 = smov 128   ;;  %s319_s23 = smov 8  }
  0x12   :  { %22 = dma.hbm_to_vmem [thread:$0]  %s395_s0, 256, %s17_s13, [#allocation3], %s318_s22, %s318_s22, %s319_s23  }
  0x13   :  { %s320_s26 = smov [#allocation5]   ;;  %s267_s30 = scalar_lea.hbm %s396_s1, 64 }
  0x14   :  { %s29_s27 = sshll.u32 %s320_s26, 4  ;;  %p268_p8 = scmp.ne.s32.totalorder %s396_s1, %s267_s30  ;;  %s30_s27 = int_to_ptr.vmem [resolvable:$true] %s29_s27 }
  0x15   :  { %p271_p9 = scmp.lt.u32.totalorder %s267_s30, %s396_s1 }
  0x17   :  { %p273_p10 = pnand %p271_p9, %p268_p8 }
  0x19   :  { %276 = shalt.err (!%p273_p10)
}
  0x1a   :  { %s277_s8 = scalar_lea.vmem %s30_s27, 64  ;;  %p282_p12 = scmp.lt.s32.totalorder %s30_s27, %s30_s27 }
  0x1b   :  { %p278_p11 = scmp.ne.s32.totalorder %s30_s27, %s277_s8  ;;  %p283_p13 = scmp.lt.s32.totalorder %s277_s8, %s277_s8 }
  0x1d   :  { %p284_p0 = por %p283_p13, %p282_p12 }
  0x1f   :  { %p285_p1 = pnand %p284_p0, %p278_p11 }
  0x21   :  { %288 = shalt.err (!%p285_p1)
}
  0x22   :  { %32 = dma.hbm_to_vmem [thread:$0]  %s396_s1, 64, %s30_s27, [#allocation6]  }
  0x23   :  { %311 = dma.done.wait [#allocation3], 256  }
  0x24   :  { %312 = vsyncadd [#allocation3], 4294967040 }
  0x25   :  { %313 = dma.done.wait [#allocation6], 64  }
  0x26   :  { %314 = vsyncadd [#allocation6], 4294967232  ;;  %vm49_vm0 = vcmask 1043456   ;;  %v41_v0 = vld [vmem:[#allocation2] sm:$0xff]  ;;  %v42_v1 = vld [vmem:[#allocation2 + $0x8] sm:$0xff]  ;;  %v321_v11 = vmov 0.0   ;;  %v72_v12 = vlaneseq }
  0x27   :  { %v45_v2 = vcombine.high %v41_v0, %v41_v0  ;;  %v50_v3 = vsel %vm49_vm0, %v41_v0, 0.0  ;;  %v46_v4 = vcombine.high %v42_v1, %v42_v1  ;;  %v55_v6 = vsel %vm49_vm0, %v42_v1, 0.0  ;;  %v62_v10 = vld [vmem:[#allocation5] sm:$0xf]  ;;  %226 = vmatprep.subr.mxu0 %v321_v11  ;;  %v220_v23 = vld [vmem:[%s397_s2] ss:$0 sm:$0xff] }
  0x28   :  { %vm322_vm1 = vmmov 0   ;;  %227 = vmatpush3.msk.msra.mxu0 %vm49_vm0, %v62_v10  ;;  %v73_v13 = vand.u32 127, %v72_v12  ;;  %v75_v14 = vshrl.u32 %v72_v12, 7  ;;  %vm82_vm2 = vcmask 1041409   ;;  %s324_s2 = smov [#allocation7]  }
  0x29   :  { %v51_v5 = vsel %vm49_vm0, %v45_v2, 0.0  ;;  %v56_v7 = vsel %vm49_vm0, %v46_v4, 0.0  ;;  %228 = vmatprep.mubr.msk.f32.mxu0 %vm322_vm1, %v321_v11  ;;  %vm84_vm3 = vcmask 31744   ;;  %v323_v35 = vmov 839922192   ;;  %s207_s11 = sshll.u32 %s324_s2, 4  ;;  %s208_s11 = int_to_ptr.vmem [resolvable:$true] %s207_s11 }
  0x2a   :  { %v52_v8 = vadd.f32 %v51_v5, %v50_v3  ;;  %v57_v9 = vadd.f32 %v56_v7, %v55_v6  ;;  %v76_v16 = vsub.s32 %v73_v13, %v75_v14  ;;  %v168_v30 = vsub.s32 0, %v75_v14  ;;  %s289_s12 = scalar_lea.vmem %s208_s11, 256  ;;  %p294_p3 = scmp.lt.s32.totalorder %s208_s11, %s208_s11 }
  0x2b   :  { %v175_v33 = vsub.s32 1, %v75_v14  ;;  %v183_v36 = vunpack.c.l.s4 %v323_v35  ;;  %p290_p2 = scmp.ne.s32.totalorder %s208_s11, %s289_s12  ;;  %p295_p4 = scmp.lt.s32.totalorder %s289_s12, %s289_s12 }
  0x2c   :  { %53 = vadd.xlane.f32.xlu0 %v52_v8 }
  0x2d   :  { %v184_v37 = vunpack.c.0.s8 %v183_v36  ;;  %p296_p5 = por %p295_p4, %p294_p3 }
  0x2f   :  { %v187_v38 = vsub.s32 %v184_v37, %v75_v14  ;;  %p297_p6 = pnand %p296_p5, %p290_p2 }
  0x30   :  { %58 = vadd.xlane.f32.xlu0 %v57_v9 }
  0xb9   :  { %v54_v15 = vpop.xlane.xlu0 %53 }
  0xba   :  { %v60_v17 = vmul.f32 0.00390625, %v54_v15 }
  0xbc   :  { %v77_v20 = vrot.slane %v60_v17, %v76_v16 }
  0xbd   :  { %v59_v18 = vpop.xlane.xlu0 %58 }
  0xbe   :  { %v61_v19 = vmul.f32 0.00390625, %v59_v18 }
  0xc0   :  { %v81_v21 = vrot.slane %v61_v19, %v76_v16 }
  0xc2   :  { %v83_v22 = vsel %vm82_vm2, %v81_v21, %v77_v20 }
  0xc3   :  { %229 = vmatmul.mubr.msk.f32.vlgmr.msra.gmra.mrb[0].mxu0 %vm84_vm3, %v83_v22 }
 0x196   :  { %v156_v24 = vpop.f32.mrb[0].mxu0 }
 0x197   :  { %v157_v25 = vadd.f32 %v220_v23, %v156_v24  ;;  %v230_v26 = vpop.f32.mrb[1].mxu0 }
 0x199   :  { %v223_v27 = vmul.f32 -1.442695, %v157_v25 }
 0x19b   :  { %241 = vpow2.f32 %v223_v27 }
 0x1a5   :  { %v242_v28 = vpop.eup %241 }
 0x1a6   :  { %v163_v29 = vadd.f32 1.0, %v242_v28 }
 0x1a8   :  { %243 = vrcp.f32 %v163_v29 }
 0x1b2   :  { %v244_v31 = vpop.eup %243 }
 0x1b3   :  { %v169_v32 = vrot.slane %v244_v31, %v168_v30  ;;  %v176_v34 = vrot.slane %v244_v31, %v175_v33 }
 0x1b5   :  { %171 = vbcast.lane.b32.xlu1 %v169_v32, 256 }
 0x1b9   :  { %178 = vbcast.lane.b32.xlu1 %v176_v34, 256 }
 0x227   :  { %v172_v39 = vpop.permute.xlu1 %171 }
 0x228   :  { %v188_v40 = vrot.slane %v172_v39, %v187_v38 }
 0x22a   :  { %v198_v41 = vmul.f32 %v188_v40, %v41_v0 }
 0x22b   :  { %v179_v42 = vpop.permute.xlu1 %178 }
 0x22c   :  { %200 = vst [vmem:[#allocation7] sm:$0xff] %v198_v41  ;;  %v195_v43 = vrot.slane %v179_v42, %v187_v38 }
 0x22e   :  { %v199_v44 = vmul.f32 %v195_v43, %v42_v1 }
 0x230   :  { %201 = vst [vmem:[#allocation7 + $0x8] sm:$0xff] %v199_v44 }
 0x231   :  { %300 = shalt.err (!%p297_p6)
}
 0x232   :  { %s301_s15 = scalar_lea.hbm %s398_s3, 256 }
 0x233   :  { %p302_p7 = scmp.ne.s32.totalorder %s398_s3, %s301_s15  ;;  %p305_p8 = scmp.lt.u32.totalorder %s301_s15, %s398_s3 }
 0x235   :  { %p307_p9 = pnand %p305_p8, %p302_p7 }
 0x237   :  { %310 = shalt.err (!%p307_p9)
}
 0x238   :  { %213 = dma.vmem_to_hbm [thread:$0]  %s208_s11, 256, %s398_s3, [#allocation4], %s318_s22, %s318_s22, %s319_s23  }
 0x239   :  { %315 = dma.done.wait [#allocation4], 256  }
 0x23a   :  { %316 = vsyncadd [#allocation4], 4294967040 }
 0x23b   :  { %217 = vsyncpa [#allocation3], 1 }
 0x23c   :  { %218 = vsyncpa [#allocation6], 1 }
 0x23d   :  { %219 = vsyncpa [#allocation4], 1 }

</bundles_post_ra>
